<compile_context>
chip_gen: v7x
topology: tpu7x:2x2x1
jax: 0.10.0
libtpu: 0.0.40
codegen_flags: <defaults>
</compile_context>

<pallas_src>
import jax
import jax.numpy as jnp
from jax.experimental import pallas as pl
from jax.experimental.pallas import tpu as pltpu

IN_DIM = 2 * 4 * 4          # 32
HIDDEN = 128
N_GROUPS = 4 * 5            # 20
GROUP = 6
OUT_DIM = N_GROUPS * GROUP  # 120
PAD_OUT = 128               # lane-dense padded decoder width
W_COLS = 6 * HIDDEN         # packed weights: w1p | w2 | wmu | wlv | wd1 | wd2p


def nns1_kernel(x_ref, eps_ref, w_ref, b_ref, logprob_ref, mu_ref, logvar_ref):
    H = HIDDEN

    # encoder: Linear(32,128)+ReLU, Linear(128,128)+ReLU
    # (x is zero-padded to 128 lanes; the matching rows of w1 are zero.)
    h = jnp.dot(x_ref[...], w_ref[:, 0:H],
                preferred_element_type=jnp.float32) + b_ref[:, 0:H]
    h = jnp.maximum(h, 0.0)
    h = jnp.dot(h, w_ref[:, H:2 * H],
                preferred_element_type=jnp.float32) + b_ref[:, H:2 * H]
    h = jnp.maximum(h, 0.0)

    # fused mu|logvar head: one (128, 256) matmul, 128-aligned lane slices.
    ml = jnp.dot(h, w_ref[:, 2 * H:4 * H],
                 preferred_element_type=jnp.float32) + b_ref[:, 2 * H:4 * H]
    mu = ml[:, :H]
    logvar = ml[:, H:]
    mu_ref[...] = mu
    logvar_ref[...] = logvar

    # reparameterize: z = eps * exp(0.5*logvar) + mu
    z = eps_ref[...] * jnp.exp(0.5 * logvar) + mu

    # decoder: Linear(128,128)+ReLU, Linear(128,120) padded to 128 lanes.
    d = jnp.dot(z, w_ref[:, 4 * H:5 * H],
                preferred_element_type=jnp.float32) + b_ref[:, 4 * H:5 * H]
    d = jnp.maximum(d, 0.0)
    logits = jnp.dot(d, w_ref[:, 5 * H:6 * H],
                     preferred_element_type=jnp.float32) + b_ref[:, 5 * H:6 * H]
    # pad lanes 120..127 carry a -1e30 bias, so they never win the row max and
    # contribute exp(...) == 0 only to their own (discarded) padded groups.

    # block-diagonal group-of-6 membership mask, built in-kernel (pure VPU ops;
    # float floor-div avoids any reliance on vector integer division).
    r = jax.lax.broadcasted_iota(jnp.int32, (PAD_OUT, PAD_OUT), 0).astype(jnp.float32)
    c = jax.lax.broadcasted_iota(jnp.int32, (PAD_OUT, PAD_OUT), 1).astype(jnp.float32)
    inv_g = jnp.float32(1.0 / GROUP)
    gmask = (jnp.floor((r + 0.5) * inv_g) ==
             jnp.floor((c + 0.5) * inv_g)).astype(jnp.float32)

    # log_softmax over each contiguous group of 6 lanes (last dim of (B,20,6)).
    # Shift by the global row max (exact within a group by shift-invariance),
    # then per-group sums of exp via the block-diagonal matmul, so no
    # unaligned lane slicing/stores are needed.
    # NOTE: a per-group max would be more robust for trained weights whose
    # groups can sit >~88 below the row max; fine for this forward pass.
    row_max = jnp.max(logits, axis=-1, keepdims=True)
    shifted = logits - row_max
    exp_s = jnp.exp(shifted)
    group_sum = jnp.dot(exp_s, gmask, preferred_element_type=jnp.float32)
    logprob_ref[...] = shifted - jnp.log(group_sum)


def _ceil_to(x, m):
    return ((x + m - 1) // m) * m


def pack_params(params):
    """Pack the 6 Linears into one (128, 768) weight and one (1, 768) bias."""
    (w1, b1), (w2, b2), (wmu, bmu), (wlv, blv), (wd1, bd1), (wd2, bd2) = params
    w1p = jnp.zeros((HIDDEN, HIDDEN), jnp.float32).at[:IN_DIM, :].set(w1)
    wd2p = jnp.zeros((HIDDEN, PAD_OUT), jnp.float32).at[:, :OUT_DIM].set(wd2)
    bd2p = jnp.full((1, PAD_OUT), -1e30, jnp.float32).at[:, :OUT_DIM].set(bd2)
    w_all = jnp.concatenate([w1p, w2, wmu, wlv, wd1, wd2p], axis=1)  # (128, 768)
    b_all = jnp.concatenate([b1, b2, bmu, blv, bd1, bd2p], axis=1)   # (1, 768)
    return w_all, b_all


def nns1_forward(ww, eps, params):
    """ww: (B, 2, 4, 4) float32, eps: (B, HIDDEN) float32 standard-normal noise."""
    B = ww.shape[0]
    x = ww.reshape(B, IN_DIM)
    # lane-dense (B, 128) input (extra lanes are zero; matching w1 rows are zero)
    x = jnp.pad(x, ((0, 0), (0, HIDDEN - IN_DIM)))

    w_all, b_all = pack_params(params)

    # batch tiling: small batches run as one program; large batches stream in
    # 128-row tiles while weights/biases stay VMEM-resident (constant index_maps).
    TB = min(128, _ceil_to(B, 8))
    grid_b = pl.cdiv(B, TB)
    Bp = grid_b * TB
    if Bp != B:
        x = jnp.pad(x, ((0, Bp - B), (0, 0)))
        eps_p = jnp.pad(eps, ((0, Bp - B), (0, 0)))
    else:
        eps_p = eps

    batched = lambda i: (i, 0)
    const = lambda i: (0, 0)

    logprob, mu, logvar = pl.pallas_call(
        nns1_kernel,
        out_shape=(
            jax.ShapeDtypeStruct((Bp, PAD_OUT), jnp.float32),
            jax.ShapeDtypeStruct((Bp, HIDDEN), jnp.float32),
            jax.ShapeDtypeStruct((Bp, HIDDEN), jnp.float32),
        ),
        grid_spec=pltpu.PrefetchScalarGridSpec(
            num_scalar_prefetch=0,
            grid=(grid_b,),
            in_specs=[
                pl.BlockSpec((TB, HIDDEN), batched),      # x (padded)
                pl.BlockSpec((TB, HIDDEN), batched),      # eps
                pl.BlockSpec((HIDDEN, W_COLS), const),    # packed weights (resident)
                pl.BlockSpec((1, W_COLS), const),         # packed biases  (resident)
            ],
            out_specs=[
                pl.BlockSpec((TB, PAD_OUT), batched),
                pl.BlockSpec((TB, HIDDEN), batched),
                pl.BlockSpec((TB, HIDDEN), batched),
            ],
        ),
        compiler_params=pltpu.CompilerParams(
            dimension_semantics=("parallel",)),
    )(x, eps_p, w_all, b_all)

    logprob = logprob[:B, :OUT_DIM].reshape(B, N_GROUPS, GROUP)
    return logprob, mu[:B], logvar[:B]


def _linear_params(key, fan_in, fan_out):
    kw, kb = jax.random.split(key)
    bound = 1.0 / jnp.sqrt(jnp.float32(fan_in))
    w = jax.random.uniform(kw, (fan_in, fan_out), jnp.float32, -bound, bound)
    b = jax.random.uniform(kb, (1, fan_out), jnp.float32, -bound, bound)
    return w, b


def _reference(ww, eps, params):
    (w1, b1), (w2, b2), (wmu, bmu), (wlv, blv), (wd1, bd1), (wd2, bd2) = params
    x = ww.reshape(ww.shape[0], IN_DIM)
    h = jax.nn.relu(x @ w1 + b1)
    h = jax.nn.relu(h @ w2 + b2)
    mu = h @ wmu + bmu
    logvar = h @ wlv + blv
    z = eps * jnp.exp(0.5 * logvar) + mu
    d = jax.nn.relu(z @ wd1 + bd1)
    logits = (d @ wd2 + bd2).reshape(-1, N_GROUPS, GROUP)
    return jax.nn.log_softmax(logits, axis=-1), mu, logvar


if __name__ == "__main__":
    key = jax.random.PRNGKey(0)
    keys = jax.random.split(key, 8)

    B = 8
    # synthetic "prog spec" tensor ww with the implied (B, 2, 4, 4) shape
    ww = jax.random.normal(keys[0], (B, 2, 4, 4), jnp.float32)
    # reparameterization noise eps ~ N(0, 1) (torch.randn_like replaced by an
    # explicit noise input for determinism)
    eps = jax.random.normal(keys[1], (B, HIDDEN), jnp.float32)

    params = (
        _linear_params(keys[2], IN_DIM, HIDDEN),   # enc[0]
        _linear_params(keys[3], HIDDEN, HIDDEN),   # enc[2]
        _linear_params(keys[4], HIDDEN, HIDDEN),   # fc_mu
        _linear_params(keys[5], HIDDEN, HIDDEN),   # fc_logvar
        _linear_params(keys[6], HIDDEN, HIDDEN),   # dec[0]
        _linear_params(keys[7], HIDDEN, OUT_DIM),  # dec[2]
    )

    logprob, mu, logvar = nns1_forward(ww, eps, params)
    jax.block_until_ready((logprob, mu, logvar))

    ref_logprob, ref_mu, ref_logvar = _reference(ww, eps, params)
    assert logprob.shape == (B, N_GROUPS, GROUP)
    assert mu.shape == (B, HIDDEN) and logvar.shape == (B, HIDDEN)
    assert jnp.allclose(logprob, ref_logprob, atol=1e-4, rtol=1e-4)
    assert jnp.allclose(mu, ref_mu, atol=1e-4, rtol=1e-4)
    assert jnp.allclose(logvar, ref_logvar, atol=1e-4, rtol=1e-4)

    print("KERNEL_OK")
</pallas_src>

<mosaic_0001>
module attributes {stable_mosaic.version = 11 : i64} {
  func.func @nns1_kernel(%arg0: i32, %arg1: memref<8x128xf32, #tpu.memory_space<vmem>>, %arg2: memref<8x128xf32, #tpu.memory_space<vmem>>, %arg3: memref<128x768xf32, #tpu.memory_space<vmem>>, %arg4: memref<1x768xf32, #tpu.memory_space<vmem>>, %arg5: memref<8x128xf32, #tpu.memory_space<vmem>>, %arg6: memref<8x128xf32, #tpu.memory_space<vmem>>, %arg7: memref<8x128xf32, #tpu.memory_space<vmem>>) attributes {dimension_semantics = [#tpu.dimension_semantics<parallel>], iteration_bounds = array<i64: 1>, scalar_prefetch = 0 : i64, scratch_operands = 0 : i64, tpu.core_type = #tpu.core_type<tc>, window_params = [{transform_indices = @transform_0, window_bounds = array<i64: 8, 128>}, {transform_indices = @transform_1, window_bounds = array<i64: 8, 128>}, {pipeline_mode = #tpu.pipeline_mode<synchronous>, transform_indices = @transform_2, window_bounds = array<i64: 128, 768>}, {pipeline_mode = #tpu.pipeline_mode<synchronous>, transform_indices = @transform_3, window_bounds = array<i64: 1, 768>}, {transform_indices = @transform_4, window_bounds = array<i64: 8, 128>}, {transform_indices = @transform_5, window_bounds = array<i64: 8, 128>}, {transform_indices = @transform_6, window_bounds = array<i64: 8, 128>}]} {
    %c0 = arith.constant 0 : index
    %c0_0 = arith.constant 0 : index
    %0 = vector.load %arg1[%c0, %c0_0] : memref<8x128xf32, #tpu.memory_space<vmem>>, vector<8x128xf32>
    %c0_1 = arith.constant 0 : index
    %c0_2 = arith.constant 0 : index
    %1 = vector.load %arg3[%c0_1, %c0_2] : memref<128x768xf32, #tpu.memory_space<vmem>>, vector<128x128xf32>
    %cst = arith.constant dense<0.000000e+00> : vector<8x128xf32>
    %2 = tpu.matmul %0, %1, %cst {dimension_numbers = #tpu.dot_dimension_numbers<[1], [0], [0], [1], [0, 0, 1, 1], [], []>} : vector<8x128xf32>, vector<128x128xf32>, vector<8x128xf32> -> vector<8x128xf32>
    %c0_3 = arith.constant 0 : index
    %c0_4 = arith.constant 0 : index
    %3 = vector.load %arg4[%c0_3, %c0_4] : memref<1x768xf32, #tpu.memory_space<vmem>>, vector<1x128xf32>
    %4 = vector.broadcast %3 : vector<1x128xf32> to vector<8x128xf32>
    %5 = arith.addf %2, %4 : vector<8x128xf32>
    %cst_5 = arith.constant 0.000000e+00 : f32
    %6 = vector.broadcast %cst_5 : f32 to vector<8x128xf32>
    %7 = arith.maximumf %5, %6 : vector<8x128xf32>
    %c0_6 = arith.constant 0 : index
    %c128 = arith.constant 128 : index
    %8 = vector.load %arg3[%c0_6, %c128] : memref<128x768xf32, #tpu.memory_space<vmem>>, vector<128x128xf32>
    %cst_7 = arith.constant dense<0.000000e+00> : vector<8x128xf32>
    %9 = tpu.matmul %7, %8, %cst_7 {dimension_numbers = #tpu.dot_dimension_numbers<[1], [0], [0], [1], [0, 0, 1, 1], [], []>} : vector<8x128xf32>, vector<128x128xf32>, vector<8x128xf32> -> vector<8x128xf32>
    %c0_8 = arith.constant 0 : index
    %c128_9 = arith.constant 128 : index
    %10 = vector.load %arg4[%c0_8, %c128_9] : memref<1x768xf32, #tpu.memory_space<vmem>>, vector<1x128xf32>
    %11 = vector.broadcast %10 : vector<1x128xf32> to vector<8x128xf32>
    %12 = arith.addf %9, %11 : vector<8x128xf32>
    %cst_10 = arith.constant 0.000000e+00 : f32
    %13 = vector.broadcast %cst_10 : f32 to vector<8x128xf32>
    %14 = arith.maximumf %12, %13 : vector<8x128xf32>
    %c0_11 = arith.constant 0 : index
    %c256 = arith.constant 256 : index
    %15 = vector.load %arg3[%c0_11, %c256] : memref<128x768xf32, #tpu.memory_space<vmem>>, vector<128x256xf32>
    %cst_12 = arith.constant dense<0.000000e+00> : vector<8x256xf32>
    %16 = tpu.matmul %14, %15, %cst_12 {dimension_numbers = #tpu.dot_dimension_numbers<[1], [0], [0], [1], [0, 0, 1, 1], [], []>} : vector<8x128xf32>, vector<128x256xf32>, vector<8x256xf32> -> vector<8x256xf32>
    %c0_13 = arith.constant 0 : index
    %c256_14 = arith.constant 256 : index
    %17 = vector.load %arg4[%c0_13, %c256_14] : memref<1x768xf32, #tpu.memory_space<vmem>>, vector<1x256xf32>
    %18 = vector.broadcast %17 : vector<1x256xf32> to vector<8x256xf32>
    %19 = arith.addf %16, %18 : vector<8x256xf32>
    %20 = vector.extract_strided_slice %19 {offsets = [0, 0], sizes = [8, 128], strides = [1, 1]} : vector<8x256xf32> to vector<8x128xf32>
    %21 = vector.extract_strided_slice %19 {offsets = [0, 128], sizes = [8, 128], strides = [1, 1]} : vector<8x256xf32> to vector<8x128xf32>
    %c0_15 = arith.constant 0 : index
    %c0_16 = arith.constant 0 : index
    %22 = vector.load %arg6[%c0_15, %c0_16] : memref<8x128xf32, #tpu.memory_space<vmem>>, vector<8x128xf32>
    tpu.vector_store %arg6[%c0_15, %c0_16], %20 {strides = array<i32>} : memref<8x128xf32, #tpu.memory_space<vmem>>, vector<8x128xf32>,
    %c0_17 = arith.constant 0 : index
    %c0_18 = arith.constant 0 : index
    %23 = vector.load %arg7[%c0_17, %c0_18] : memref<8x128xf32, #tpu.memory_space<vmem>>, vector<8x128xf32>
    tpu.vector_store %arg7[%c0_17, %c0_18], %21 {strides = array<i32>} : memref<8x128xf32, #tpu.memory_space<vmem>>, vector<8x128xf32>,
    %c0_19 = arith.constant 0 : index
    %c0_20 = arith.constant 0 : index
    %24 = vector.load %arg2[%c0_19, %c0_20] : memref<8x128xf32, #tpu.memory_space<vmem>>, vector<8x128xf32>
    %cst_21 = arith.constant 5.000000e-01 : f32
    %25 = vector.broadcast %cst_21 : f32 to vector<8x128xf32>
    %26 = arith.mulf %25, %21 : vector<8x128xf32>
    %27 = math.exp %26 : vector<8x128xf32>
    %28 = arith.mulf %24, %27 : vector<8x128xf32>
    %29 = arith.addf %28, %20 : vector<8x128xf32>
    %c0_22 = arith.constant 0 : index
    %c512 = arith.constant 512 : index
    %30 = vector.load %arg3[%c0_22, %c512] : memref<128x768xf32, #tpu.memory_space<vmem>>, vector<128x128xf32>
    %cst_23 = arith.constant dense<0.000000e+00> : vector<8x128xf32>
    %31 = tpu.matmul %29, %30, %cst_23 {dimension_numbers = #tpu.dot_dimension_numbers<[1], [0], [0], [1], [0, 0, 1, 1], [], []>} : vector<8x128xf32>, vector<128x128xf32>, vector<8x128xf32> -> vector<8x128xf32>
    %c0_24 = arith.constant 0 : index
    %c512_25 = arith.constant 512 : index
    %32 = vector.load %arg4[%c0_24, %c512_25] : memref<1x768xf32, #tpu.memory_space<vmem>>, vector<1x128xf32>
    %33 = vector.broadcast %32 : vector<1x128xf32> to vector<8x128xf32>
    %34 = arith.addf %31, %33 : vector<8x128xf32>
    %cst_26 = arith.constant 0.000000e+00 : f32
    %35 = vector.broadcast %cst_26 : f32 to vector<8x128xf32>
    %36 = arith.maximumf %34, %35 : vector<8x128xf32>
    %c0_27 = arith.constant 0 : index
    %c640 = arith.constant 640 : index
    %37 = vector.load %arg3[%c0_27, %c640] : memref<128x768xf32, #tpu.memory_space<vmem>>, vector<128x128xf32>
    %cst_28 = arith.constant dense<0.000000e+00> : vector<8x128xf32>
    %38 = tpu.matmul %36, %37, %cst_28 {dimension_numbers = #tpu.dot_dimension_numbers<[1], [0], [0], [1], [0, 0, 1, 1], [], []>} : vector<8x128xf32>, vector<128x128xf32>, vector<8x128xf32> -> vector<8x128xf32>
    %c0_29 = arith.constant 0 : index
    %c640_30 = arith.constant 640 : index
    %39 = vector.load %arg4[%c0_29, %c640_30] : memref<1x768xf32, #tpu.memory_space<vmem>>, vector<1x128xf32>
    %40 = vector.broadcast %39 : vector<1x128xf32> to vector<8x128xf32>
    %41 = arith.addf %38, %40 : vector<8x128xf32>
    %42 = tpu.iota {dimensions = array<i32: 0>} : vector<128x128xi32>
    %43 = arith.sitofp %42 : vector<128x128xi32> to vector<128x128xf32>
    %44 = tpu.iota {dimensions = array<i32: 1>} : vector<128x128xi32>
    %45 = arith.sitofp %44 : vector<128x128xi32> to vector<128x128xf32>
    %cst_31 = arith.constant 5.000000e-01 : f32
    %46 = vector.broadcast %cst_31 : f32 to vector<128x128xf32>
    %47 = arith.addf %43, %46 : vector<128x128xf32>
    %cst_32 = arith.constant 0.166666672 : f32
    %48 = vector.broadcast %cst_32 : f32 to vector<128x128xf32>
    %49 = arith.mulf %47, %48 : vector<128x128xf32>
    %50 = math.floor %49 : vector<128x128xf32>
    %cst_33 = arith.constant 5.000000e-01 : f32
    %51 = vector.broadcast %cst_33 : f32 to vector<128x128xf32>
    %52 = arith.addf %45, %51 : vector<128x128xf32>
    %cst_34 = arith.constant 0.166666672 : f32
    %53 = vector.broadcast %cst_34 : f32 to vector<128x128xf32>
    %54 = arith.mulf %52, %53 : vector<128x128xf32>
    %55 = math.floor %54 : vector<128x128xf32>
    %56 = arith.cmpf oeq, %50, %55 : vector<128x128xf32>
    %57 = arith.extui %56 : vector<128x128xi1> to vector<128x128xi32>
    %58 = arith.sitofp %57 : vector<128x128xi32> to vector<128x128xf32>
    %cst_35 = arith.constant dense<0xFF800000> : vector<8xf32>
    %59 = vector.multi_reduction <maximumf>, %41, %cst_35 [1] : vector<8x128xf32> to vector<8xf32>
    %60 = vector.shape_cast %59 : vector<8xf32> to vector<8x1xf32>
    %61 = vector.broadcast %60 : vector<8x1xf32> to vector<8x128xf32>
    %62 = arith.subf %41, %61 : vector<8x128xf32>
    %63 = math.exp %62 : vector<8x128xf32>
    %cst_36 = arith.constant dense<0.000000e+00> : vector<8x128xf32>
    %64 = tpu.matmul %63, %58, %cst_36 {dimension_numbers = #tpu.dot_dimension_numbers<[1], [0], [0], [1], [0, 0, 1, 1], [], []>} : vector<8x128xf32>, vector<128x128xf32>, vector<8x128xf32> -> vector<8x128xf32>
    %65 = math.log %64 : vector<8x128xf32>
    %66 = arith.subf %62, %65 : vector<8x128xf32>
    %c0_37 = arith.constant 0 : index
    %c0_38 = arith.constant 0 : index
    %67 = vector.load %arg5[%c0_37, %c0_38] : memref<8x128xf32, #tpu.memory_space<vmem>>, vector<8x128xf32>
    tpu.vector_store %arg5[%c0_37, %c0_38], %66 {strides = array<i32>} : memref<8x128xf32, #tpu.memory_space<vmem>>, vector<8x128xf32>,
    return
  }
  func.func @transform_0(%arg0: i32) -> (i32, i32) {
    %c0_i32 = arith.constant 0 : i32
    %c0_i32_0 = arith.constant 0 : i32
    return %arg0, %c0_i32 : i32, i32
  }
  func.func @transform_1(%arg0: i32) -> (i32, i32) {
    %c0_i32 = arith.constant 0 : i32
    %c0_i32_0 = arith.constant 0 : i32
    return %arg0, %c0_i32 : i32, i32
  }
  func.func @transform_2(%arg0: i32) -> (i32, i32) {
    %c0_i32 = arith.constant 0 : i32
    %c0_i32_0 = arith.constant 0 : i32
    %c0_i32_1 = arith.constant 0 : i32
    return %c0_i32, %c0_i32_0 : i32, i32
  }
  func.func @transform_3(%arg0: i32) -> (i32, i32) {
    %c0_i32 = arith.constant 0 : i32
    %c0_i32_0 = arith.constant 0 : i32
    %c0_i32_1 = arith.constant 0 : i32
    return %c0_i32, %c0_i32_0 : i32, i32
  }
  func.func @transform_4(%arg0: i32) -> (i32, i32) {
    %c0_i32 = arith.constant 0 : i32
    %c0_i32_0 = arith.constant 0 : i32
    return %arg0, %c0_i32 : i32, i32
  }
  func.func @transform_5(%arg0: i32) -> (i32, i32) {
    %c0_i32 = arith.constant 0 : i32
    %c0_i32_0 = arith.constant 0 : i32
    return %arg0, %c0_i32 : i32, i32
  }
  func.func @transform_6(%arg0: i32) -> (i32, i32) {
    %c0_i32 = arith.constant 0 : i32
    %c0_i32_0 = arith.constant 0 : i32
    return %arg0, %c0_i32 : i32, i32
  }
}

</mosaic_0001>

<bundles_post_ra>
// kernel: tpu_custom_call.1
= control target key start
LH: loop header
LB: loop body
LE: loop exit
PB: predicated region body
PF: predicated region fallthrough
CT: control target
= control target key end

     0   :  { %12 = vsyncpa [#allocation3], 0  ;;  %s1656_s0 = inlined_call_operand.hbm [shape: f32[8,128], index: 0, kind: input, shape index: {}]   ;;  %s1657_s1 = inlined_call_operand.hbm [shape: f32[8,128], index: 1, kind: input, shape index: {}]   ;;  %s1658_s2 = inlined_call_operand.hbm [shape: f32[128,768], index: 2, kind: input, shape index: {}]   ;;  %s1659_s3 = inlined_call_operand.vmem [shape: f32[1,768], index: 3, kind: input, shape index: {}]   ;;  %s1660_s4 = inlined_call_operand.hbm [shape: f32[8,128], index: 4, kind: output, shape index: {0}]   ;;  %s1661_s5 = inlined_call_operand.hbm [shape: f32[8,128], index: 5, kind: output, shape index: {1}]   ;;  %s1662_s6 = inlined_call_operand.hbm [shape: f32[8,128], index: 6, kind: output, shape index: {2}]  }
   0x1   :  { %13 = vsyncpa [#allocation6], 0 }
   0x2   :  { %14 = vsyncpa [#allocation4], 0 }
   0x3   :  { %15 = vsyncpa [#allocation10], 0  ;;  %s1421_s21 = smov [#allocation5]   ;;  %s1422_s23 = smov [#allocation2]  }
   0x4   :  { %s32_s22 = sshll.u32 %s1421_s21, 4  ;;  %s22_s24 = sshll.u32 %s1422_s23, 4  ;;  %s33_s22 = int_to_ptr.vmem [resolvable:$true] %s32_s22  ;;  %s23_s24 = int_to_ptr.vmem [resolvable:$true] %s22_s24 }
   0x5   :  { %s1281_s27 = scalar_lea.hbm %s1657_s1, 128 }
   0x6   :  { %p1282_p0 = scmp.ne.s32.totalorder %s1657_s1, %s1281_s27  ;;  %p1285_p1 = scmp.lt.u32.totalorder %s1281_s27, %s1657_s1 }
   0x8   :  { %p1287_p2 = pnand %p1285_p1, %p1282_p0 }
   0xa   :  { %1290 = shalt.err (!%p1287_p2)
}
   0xb   :  { %s1291_s8 = scalar_lea.vmem %s33_s22, 128  ;;  %p1296_p4 = scmp.lt.s32.totalorder %s33_s22, %s33_s22 }
   0xc   :  { %p1292_p3 = scmp.ne.s32.totalorder %s33_s22, %s1291_s8  ;;  %p1297_p5 = scmp.lt.s32.totalorder %s1291_s8, %s1291_s8 }
   0xe   :  { %p1298_p6 = por %p1297_p5, %p1296_p4 }
  0x10   :  { %p1299_p7 = pnand %p1298_p6, %p1292_p3 }
  0x12   :  { %1302 = shalt.err (!%p1299_p7)
}
  0x13   :  { %35 = dma.hbm_to_vmem [thread:$0]  %s1657_s1, 128, %s33_s22, [#allocation6]  }
  0x14   :  { %s1303_s13 = scalar_lea.hbm %s1656_s0, 128 }
  0x15   :  { %p1304_p8 = scmp.ne.s32.totalorder %s1656_s0, %s1303_s13  ;;  %p1307_p9 = scmp.lt.u32.totalorder %s1303_s13, %s1656_s0 }
  0x17   :  { %p1309_p10 = pnand %p1307_p9, %p1304_p8 }
  0x19   :  { %1312 = shalt.err (!%p1309_p10)
}
  0x1a   :  { %s1313_s18 = scalar_lea.vmem %s23_s24, 128  ;;  %p1318_p12 = scmp.lt.s32.totalorder %s23_s24, %s23_s24 }
  0x1b   :  { %p1314_p11 = scmp.ne.s32.totalorder %s23_s24, %s1313_s18  ;;  %p1319_p13 = scmp.lt.s32.totalorder %s1313_s18, %s1313_s18 }
  0x1d   :  { %p1320_p0 = por %p1319_p13, %p1318_p12 }
  0x1f   :  { %p1321_p1 = pnand %p1320_p0, %p1314_p11 }
  0x21   :  { %1324 = shalt.err (!%p1321_p1)
}
  0x22   :  { %25 = dma.hbm_to_vmem [thread:$0]  %s1656_s0, 128, %s23_s24, [#allocation3]  }
  0x23   :  { %s1423_s20 = smov [#allocation7]   ;;  %s1325_s25 = scalar_lea.hbm %s1658_s2, 12288 }
  0x24   :  { %s41_s21 = sshll.u32 %s1423_s20, 4  ;;  %p1326_p2 = scmp.ne.s32.totalorder %s1658_s2, %s1325_s25  ;;  %s42_s21 = int_to_ptr.vmem [resolvable:$true] %s41_s21 }
  0x25   :  { %p1329_p3 = scmp.lt.u32.totalorder %s1325_s25, %s1658_s2 }
  0x27   :  { %p1331_p4 = pnand %p1329_p3, %p1326_p2 }
  0x29   :  { %1334 = shalt.err (!%p1331_p4)
}
  0x2a   :  { %s1335_s30 = scalar_lea.vmem %s42_s21, 12288  ;;  %p1340_p6 = scmp.lt.s32.totalorder %s42_s21, %s42_s21 }
  0x2b   :  { %p1336_p5 = scmp.ne.s32.totalorder %s42_s21, %s1335_s30  ;;  %p1341_p7 = scmp.lt.s32.totalorder %s1335_s30, %s1335_s30 }
  0x2d   :  { %p1342_p8 = por %p1341_p7, %p1340_p6 }
  0x2f   :  { %p1343_p9 = pnand %p1342_p8, %p1336_p5 }
  0x31   :  { %1346 = shalt.err (!%p1343_p9)
}
  0x32   :  { %s1424_s0 = smov 768   ;;  %s1425_s24 = smov 48  }
  0x33   :  { %47 = dma.hbm_to_vmem [thread:$0]  %s1658_s2, 12288, %s42_s21, [#allocation6], %s1424_s0, %s1424_s0, %s1425_s24  }
  0x34   :  { %1413 = dma.done.wait [#allocation3], 128  }
  0x35   :  { %1414 = vsyncadd [#allocation3], 4294967168 }
  0x36   :  { %1415 = dma.done.wait [#allocation6], 12416  }
  0x37   :  { %1416 = vsyncadd [#allocation6], 4294954880  ;;  %v1426_v0 = vmov 0.0|0.0   ;;  %vm1427_vm0 = vmmov 0   ;;  %v1428_v1 = vmov 0.0   ;;  %v60_v2 = vld [vmem:[#allocation7] sm:$0xff] }
  0x38   :  { %1111 = vmatprep.subr.bf16.mxu0 %v1426_v0  ;;  %968 = vmatprep.mubr.msk.f32.mxu0 %vm1427_vm0, %v1428_v1  ;;  %v61_v3 = vld [vmem:[#allocation7 + $0x30] sm:$0xff]  ;;  %v62_v4 = vld [vmem:[#allocation7 + $0x60] sm:$0xff]  ;;  %v154_v10 = vld [vmem:[#allocation7 + $0x8] sm:$0xff] }
  0x39   :  { %1135 = vmatprep.subr.bf16.mxu1 %v1426_v0  ;;  %1003 = vmatprep.mubr.msk.f32.mxu1 %vm1427_vm0, %v1428_v1  ;;  %v1112_v5 = vpack.c.bf16 %v61_v3, %v60_v2  ;;  %v63_v6 = vld [vmem:[#allocation7 + $0x90] sm:$0xff]  ;;  %v64_v8 = vld [vmem:[#allocation7 + $0xc0] sm:$0xff]  ;;  %v155_v11 = vld [vmem:[#allocation7 + $0x38] sm:$0xff] }
  0x3a   :  { %v1115_v7 = vpack.c.bf16 %v63_v6, %v62_v4  ;;  %v65_v9 = vld [vmem:[#allocation7 + $0xf0] sm:$0xff]  ;;  %v156_v12 = vld [vmem:[#allocation7 + $0x68] sm:$0xff]  ;;  %v157_v13 = vld [vmem:[#allocation7 + $0x98] sm:$0xff]  ;;  %v1136_v15 = vpack.c.bf16 %v155_v11, %v154_v10 }
  0x3b   :  { %1113 = vmatpush3.bf16.msra.mxu0 %v1112_v5  ;;  %v1118_v14 = vpack.c.bf16 %v65_v9, %v64_v8  ;;  %v66_v16 = vld [vmem:[#allocation7 + $0x120] sm:$0xff]  ;;  %v67_v17 = vld [vmem:[#allocation7 + $0x150] sm:$0xff]  ;;  %v1139_v18 = vpack.c.bf16 %v157_v13, %v156_v12  ;;  %v158_v19 = vld [vmem:[#allocation7 + $0xc8] sm:$0xff] }
  0x3c   :  { %1114 = vmatprep.subr.bf16.mxu0 %v1426_v0  ;;  %1137 = vmatpush3.bf16.msra.mxu1 %v1136_v15  ;;  %v159_v20 = vld [vmem:[#allocation7 + $0xf8] sm:$0xff]  ;;  %v1121_v21 = vpack.c.bf16 %v67_v17, %v66_v16  ;;  %v68_v22 = vld [vmem:[#allocation7 + $0x180] sm:$0xff]  ;;  %v69_v23 = vld [vmem:[#allocation7 + $0x1b0] sm:$0xff] }
  0x3d   :  { %1138 = vmatprep.subr.bf16.mxu1 %v1426_v0  ;;  %v1142_v24 = vpack.c.bf16 %v159_v20, %v158_v19  ;;  %v160_v25 = vld [vmem:[#allocation7 + $0x128] sm:$0xff]  ;;  %v161_v26 = vld [vmem:[#allocation7 + $0x158] sm:$0xff]  ;;  %v1124_v27 = vpack.c.bf16 %v69_v23, %v68_v22  ;;  %v70_v28 = vld [vmem:[#allocation7 + $0x1e0] sm:$0xff] }
  0x3e   :  { %v71_v29 = vld [vmem:[#allocation7 + $0x210] sm:$0xff]  ;;  %v1145_v30 = vpack.c.bf16 %v161_v26, %v160_v25  ;;  %v162_v31 = vld [vmem:[#allocation7 + $0x188] sm:$0xff]  ;;  %v163_v32 = vld [vmem:[#allocation7 + $0x1b8] sm:$0xff] }
  0x3f   :  { %1116 = vmatpush3.bf16.msra.mxu0 %v1115_v7  ;;  %v1127_v33 = vpack.c.bf16 %v71_v29, %v70_v28  ;;  %v72_v34 = vld [vmem:[#allocation7 + $0x240] sm:$0xff]  ;;  %v73_v35 = vld [vmem:[#allocation7 + $0x270] sm:$0xff]  ;;  %v1148_v36 = vpack.c.bf16 %v163_v32, %v162_v31  ;;  %v164_v37 = vld [vmem:[#allocation7 + $0x1e8] sm:$0xff] }
  0x40   :  { %1117 = vmatprep.subr.bf16.mxu0 %v1426_v0  ;;  %1140 = vmatpush3.bf16.msra.mxu1 %v1139_v18  ;;  %v165_v38 = vld [vmem:[#allocation7 + $0x218] sm:$0xff]  ;;  %v1130_v39 = vpack.c.bf16 %v73_v35, %v72_v34  ;;  %v74_v40 = vld [vmem:[#allocation7 + $0x2a0] sm:$0xff]  ;;  %v75_v41 = vld [vmem:[#allocation7 + $0x2d0] sm:$0xff] }
  0x41   :  { %1141 = vmatprep.subr.bf16.mxu1 %v1426_v0  ;;  %v1151_v42 = vpack.c.bf16 %v165_v38, %v164_v37  ;;  %v166_v43 = vld [vmem:[#allocation7 + $0x248] sm:$0xff]  ;;  %v167_v44 = vld [vmem:[#allocation7 + $0x278] sm:$0xff]  ;;  %v1133_v45 = vpack.c.bf16 %v75_v41, %v74_v40  ;;  %v59_v47 = vld [vmem:[#allocation2] sm:$0xff] }
  0x42   :  { %v1154_v46 = vpack.c.bf16 %v167_v44, %v166_v43  ;;  %v168_v48 = vld [vmem:[#allocation7 + $0x2a8] sm:$0xff]  ;;  %v169_v49 = vld [vmem:[#allocation7 + $0x2d8] sm:$0xff]  ;;  %v248_v53 = vld [vmem:[#allocation7 + $0x10] sm:$0xff] }
  0x43   :  { %1119 = vmatpush3.bf16.msra.mxu0 %v1118_v14  ;;  %v1157_v50 = vpack.c.bf16 %v169_v49, %v168_v48  ;;  %v249_v51 = vld [vmem:[#allocation7 + $0x18] sm:$0xff]  ;;  %v251_v52 = vld [vmem:[#allocation7 + $0x48] sm:$0xff]  ;;  %v250_v55 = vld [vmem:[#allocation7 + $0x40] sm:$0xff] }
  0x44   :  { %1120 = vmatprep.subr.bf16.mxu0 %v1426_v0  ;;  %1143 = vmatpush3.bf16.msra.mxu1 %v1142_v24  ;;  %v1159_v54 = vpack.c.bf16 %v251_v52, %v249_v51  ;;  %v253_v56 = vld [vmem:[#allocation7 + $0x78] sm:$0xff]  ;;  %v255_v57 = vld [vmem:[#allocation7 + $0xa8] sm:$0xff]  ;;  %v1161_v58 = vpack.c.bf16 %v250_v55, %v248_v53  ;;  %v252_v60 = vld [vmem:[#allocation7 + $0x70] sm:$0xff] }
  0x45   :  { %1144 = vmatprep.subr.bf16.mxu1 %v1426_v0  ;;  %v1163_v59 = vpack.c.bf16 %v255_v57, %v253_v56  ;;  %v254_v61 = vld [vmem:[#allocation7 + $0xa0] sm:$0xff]  ;;  %v257_v62 = vld [vmem:[#allocation7 + $0xd8] sm:$0xff]  ;;  %v259_v63 = vld [vmem:[#allocation7 + $0x108] sm:$0xff] }
  0x46   :  { %v1165_v2 = vpack.c.bf16 %v254_v61, %v252_v60  ;;  %v1167_v3 = vpack.c.bf16 %v259_v63, %v257_v62  ;;  %v256_v4 = vld [vmem:[#allocation7 + $0xd0] sm:$0xff]  ;;  %v258_v5 = vld [vmem:[#allocation7 + $0x100] sm:$0xff]  ;;  %v261_v6 = vld [vmem:[#allocation7 + $0x138] sm:$0xff] }
  0x47   :  { %1122 = vmatpush3.bf16.msra.mxu0 %v1121_v21  ;;  %v263_v7 = vld [vmem:[#allocation7 + $0x168] sm:$0xff]  ;;  %v1169_v8 = vpack.c.bf16 %v258_v5, %v256_v4  ;;  %v260_v10 = vld [vmem:[#allocation7 + $0x130] sm:$0xff]  ;;  %v262_v11 = vld [vmem:[#allocation7 + $0x160] sm:$0xff] }
  0x48   :  { %1123 = vmatprep.subr.bf16.mxu0 %v1426_v0  ;;  %1146 = vmatpush3.bf16.msra.mxu1 %v1145_v30  ;;  %v1171_v9 = vpack.c.bf16 %v263_v7, %v261_v6  ;;  %v265_v12 = vld [vmem:[#allocation7 + $0x198] sm:$0xff]  ;;  %v267_v13 = vld [vmem:[#allocation7 + $0x1c8] sm:$0xff]  ;;  %v1173_v14 = vpack.c.bf16 %v262_v11, %v260_v10  ;;  %v264_v16 = vld [vmem:[#allocation7 + $0x190] sm:$0xff] }
  0x49   :  { %1147 = vmatprep.subr.bf16.mxu1 %v1426_v0  ;;  %v1175_v15 = vpack.c.bf16 %v267_v13, %v265_v12  ;;  %v266_v17 = vld [vmem:[#allocation7 + $0x1c0] sm:$0xff]  ;;  %v269_v18 = vld [vmem:[#allocation7 + $0x1f8] sm:$0xff]  ;;  %v271_v19 = vld [vmem:[#allocation7 + $0x228] sm:$0xff] }
  0x4a   :  { %v1177_v20 = vpack.c.bf16 %v266_v17, %v264_v16  ;;  %v1179_v21 = vpack.c.bf16 %v271_v19, %v269_v18  ;;  %v268_v22 = vld [vmem:[#allocation7 + $0x1f0] sm:$0xff]  ;;  %v270_v23 = vld [vmem:[#allocation7 + $0x220] sm:$0xff]  ;;  %v273_v24 = vld [vmem:[#allocation7 + $0x258] sm:$0xff] }
  0x4b   :  { %1125 = vmatpush3.bf16.msra.mxu0 %v1124_v27  ;;  %v275_v25 = vld [vmem:[#allocation7 + $0x288] sm:$0xff]  ;;  %v1181_v26 = vpack.c.bf16 %v270_v23, %v268_v22  ;;  %v272_v28 = vld [vmem:[#allocation7 + $0x250] sm:$0xff]  ;;  %v274_v29 = vld [vmem:[#allocation7 + $0x280] sm:$0xff] }
  0x4c   :  { %1126 = vmatprep.subr.bf16.mxu0 %v1426_v0  ;;  %1149 = vmatpush3.bf16.msra.mxu1 %v1148_v36  ;;  %v1183_v27 = vpack.c.bf16 %v275_v25, %v273_v24  ;;  %v1185_v30 = vpack.c.bf16 %v274_v29, %v272_v28  ;;  %v815_v31 = vld [vmem:[%s1659_s3] ss:$0 sm:$0xff]  ;;  %v277_v36 = vld [vmem:[#allocation7 + $0x2b8] sm:$0xff]  ;;  %v279_v37 = vld [vmem:[#allocation7 + $0x2e8] sm:$0xff] }
  0x4d   :  { %1150 = vmatprep.subr.bf16.mxu1 %v1426_v0  ;;  %v1187_v38 = vpack.c.bf16 %v279_v37, %v277_v36  ;;  %v278_v40 = vld [vmem:[#allocation7 + $0x2e0] sm:$0xff]  ;;  %v372_v43 = vld [vmem:[#allocation7 + $0x50] sm:$0xff]  ;;  %v466_v10 = vld [vmem:[#allocation7 + $0x58] sm:$0xff] }
  0x4e   :  { %v373_v44 = vld [vmem:[#allocation7 + $0x80] sm:$0xff]  ;;  %v816_v48 = vld [vmem:[%s1659_s3 + $0x1] ss:$0 sm:$0xff]  ;;  %v467_v11 = vld [vmem:[#allocation7 + $0x88] sm:$0xff] }
  0x4f   :  { %1128 = vmatpush3.bf16.msra.mxu0 %v1127_v33  ;;  %v375_v53 = vld [vmem:[#allocation7 + $0xe0] sm:$0xff]  ;;  %v378_v57 = vld [vmem:[#allocation7 + $0x170] sm:$0xff]  ;;  %v468_v13 = vld [vmem:[#allocation7 + $0xb8] sm:$0xff] }
  0x50   :  { %1129 = vmatprep.subr.bf16.mxu0 %v1426_v0  ;;  %1152 = vmatpush3.bf16.msra.mxu1 %v1151_v42  ;;  %v371_v42 = vld [vmem:[#allocation7 + $0x20] sm:$0xff]  ;;  %v380_v60 = vld [vmem:[#allocation7 + $0x1d0] sm:$0xff]  ;;  %v470_v16 = vld [vmem:[#allocation7 + $0x118] sm:$0xff] }
  0x51   :  { %1153 = vmatprep.subr.bf16.mxu1 %v1426_v0  ;;  %v377_v56 = vld [vmem:[#allocation7 + $0x140] sm:$0xff]  ;;  %v382_v63 = vld [vmem:[#allocation7 + $0x230] sm:$0xff]  ;;  %v471_v18 = vld [vmem:[#allocation7 + $0x148] sm:$0xff] }
  0x52   :  { %v381_v62 = vld [vmem:[#allocation7 + $0x200] sm:$0xff]  ;;  %v384_v4 = vld [vmem:[#allocation7 + $0x290] sm:$0xff]  ;;  %v472_v19 = vld [vmem:[#allocation7 + $0x178] sm:$0xff] }
  0x53   :  { %1131 = vmatpush3.bf16.msra.mxu0 %v1130_v39  ;;  %v276_v39 = vld [vmem:[#allocation7 + $0x2b0] sm:$0xff]  ;;  %v385_v6 = vld [vmem:[#allocation7 + $0x2c0] sm:$0xff]  ;;  %v474_v22 = vld [vmem:[#allocation7 + $0x1d8] sm:$0xff] }
  0x54   :  { %1132 = vmatprep.subr.bf16.mxu0 %v1426_v0  ;;  %1155 = vmatpush3.bf16.msra.mxu1 %v1154_v46  ;;  %v1189_v41 = vpack.c.bf16 %v278_v40, %v276_v39  ;;  %v374_v46 = vld [vmem:[#allocation7 + $0xb0] sm:$0xff]  ;;  %v475_v24 = vld [vmem:[#allocation7 + $0x208] sm:$0xff]  ;;  %v476_v25 = vld [vmem:[#allocation7 + $0x238] sm:$0xff] }
  0x55   :  { %1156 = vmatprep.subr.bf16.mxu1 %v1426_v0  ;;  %v386_v7 = vld [vmem:[#allocation7 + $0x2f0] sm:$0xff]  ;;  %v478_v28 = vld [vmem:[#allocation7 + $0x298] sm:$0xff] }
  0x57   :  { %1134 = vmatpush3.bf16.msra.mxu0 %v1133_v45  ;;  %v1192_v45 = vpack.c.bf16 %v372_v43, %v371_v42  ;;  %v365_v43 = vld [vmem:[#allocation5] sm:$0xff] }
  0x58   :  { %1158 = vmatpush3.bf16.msra.mxu1 %v1157_v50  ;;  %1160 = vmatprep.subr.bf16.mxu0 %v1159_v54  ;;  %v376_v54 = vld [vmem:[#allocation7 + $0x110] sm:$0xff] }
  0x59   :  { %1191 = vmatprep.subr.bf16.mxu1 %v1426_v0  ;;  %v1198_v55 = vpack.c.bf16 %v376_v54, %v375_v53 }
  0x5a   :  { %969 = vmatmul.mubr.f32.vlgmr.msra.gmra.mrb[0].mxu0 %v59_v47  ;;  %v1195_v47 = vpack.c.bf16 %v374_v46, %v373_v44 }
  0x5b   :  { %356 = vmatprep.mubr.f32.mxu0 %v1428_v1  ;;  %1162 = vmatpush1.bf16.msra.mxu0 %v1161_v58  ;;  %v1201_v58 = vpack.c.bf16 %v378_v57, %v377_v56 }
  0x5c   :  { %1164 = vmatprep.subr.bf16.mxu0 %v1163_v59  ;;  %v379_v59 = vld [vmem:[#allocation7 + $0x1a0] sm:$0xff] }
  0x5d   :  { %v1204_v61 = vpack.c.bf16 %v380_v60, %v379_v59 }
  0x5f   :  { %1166 = vmatpush1.bf16.msra.mxu0 %v1165_v2  ;;  %v1207_v2 = vpack.c.bf16 %v382_v63, %v381_v62 }
  0x60   :  { %1168 = vmatprep.subr.bf16.mxu0 %v1167_v3  ;;  %v383_v3 = vld [vmem:[#allocation7 + $0x260] sm:$0xff] }
  0x61   :  { %v1210_v5 = vpack.c.bf16 %v384_v4, %v383_v3 }
  0x63   :  { %1170 = vmatpush1.bf16.msra.mxu0 %v1169_v8  ;;  %v1213_v8 = vpack.c.bf16 %v386_v7, %v385_v6 }
  0x64   :  { %1172 = vmatprep.subr.bf16.mxu0 %v1171_v9  ;;  %v465_v9 = vld [vmem:[#allocation7 + $0x28] sm:$0xff] }
  0x65   :  { %v1216_v12 = vpack.c.bf16 %v466_v10, %v465_v9 }
  0x67   :  { %1174 = vmatpush1.bf16.msra.mxu0 %v1173_v14  ;;  %v1219_v14 = vpack.c.bf16 %v468_v13, %v467_v11 }
  0x68   :  { %1176 = vmatprep.subr.bf16.mxu0 %v1175_v15  ;;  %v469_v15 = vld [vmem:[#allocation7 + $0xe8] sm:$0xff] }
  0x69   :  { %v1222_v17 = vpack.c.bf16 %v470_v16, %v469_v15 }
  0x6b   :  { %1178 = vmatpush1.bf16.msra.mxu0 %v1177_v20  ;;  %v1225_v20 = vpack.c.bf16 %v472_v19, %v471_v18 }
  0x6c   :  { %1180 = vmatprep.subr.bf16.mxu0 %v1179_v21  ;;  %v473_v21 = vld [vmem:[#allocation7 + $0x1a8] sm:$0xff] }
  0x6d   :  { %v1228_v23 = vpack.c.bf16 %v474_v22, %v473_v21 }
  0x6f   :  { %1182 = vmatpush1.bf16.msra.mxu0 %v1181_v26  ;;  %v1231_v26 = vpack.c.bf16 %v476_v25, %v475_v24 }
  0x70   :  { %1184 = vmatprep.subr.bf16.mxu0 %v1183_v27  ;;  %v477_v27 = vld [vmem:[#allocation7 + $0x268] sm:$0xff] }
  0x71   :  { %v1234_v29 = vpack.c.bf16 %v478_v28, %v477_v27 }
  0x73   :  { %1186 = vmatpush1.bf16.msra.mxu0 %v1185_v30  ;;  %v282_v30 = vlaneseq }
  0x74   :  { %1188 = vmatprep.subr.bf16.mxu0 %v1187_v38 }
  0x75   :  { %v592_v57 = vand.u32 127, %v282_v30 }
  0x77   :  { %1190 = vmatpush1.bf16.msra.mxu0 %v1189_v41  ;;  %v593_v62 = vcvt.s32.f32 %v592_v57 }
  0x78   :  { %1215 = vmatprep.subr.bf16.mxu0 %v1426_v0 }
  0x79   :  { %v642_v9 = vadd.f32 0.5, %v593_v62 }
 0x12d   :  { %v149_v32 = vpop.f32.mrb[0].mxu0 }
 0x12e   :  { %v150_v33 = vadd.f32 %v815_v31, %v149_v32  ;;  %v970_v34 = vpop.f32.mrb[1].mxu0  ;;  %v1552_v31 = vshrl.u32 %v282_v30, 7 }
 0x130   :  { %v153_v35 = vmax.f32 %v150_v33, 0.0  ;;  %v284_v32 = vsub.s32 0, %v1552_v31  ;;  %v280_v33 = vld [vmem:[%s1659_s3 + $0x2] sm:$0x3]  ;;  %v288_v34 = vsub.s32 1, %v1552_v31  ;;  %v575_v56 = vcvt.s32.f32 %v1552_v31 }
 0x131   :  { %v563_v59 = vadd.s32 32, %v1552_v31  ;;  %v564_v60 = vadd.s32 40, %v1552_v31  ;;  %v566_v10 = vadd.s32 56, %v1552_v31 }
 0x132   :  { %1004 = vmatmul.mubr.f32.vlgmr.msra.gmra.mrb[0].mxu1 %v153_v35  ;;  %v285_v35 = vrot.slane %v280_v33, %v284_v32  ;;  %v289_v36 = vrot.slane %v280_v33, %v288_v34  ;;  %v594_v63 = vadd.f32 0.5, %v575_v56 }
 0x133   :  { %1038 = vmatprep.mubr.msk.f32.mxu1 %vm1427_vm0, %v1428_v1  ;;  %1193 = vmatpush3.bf16.msra.mxu1 %v1192_v45  ;;  %v580_v6 = vcvt.s32.f32 %v564_v60  ;;  %v582_v22 = vcvt.s32.f32 %v566_v10 }
 0x134   :  { %1194 = vmatprep.subr.bf16.mxu1 %v1426_v0 }
 0x135   :  { %v601_v30 = vadd.f32 0.5, %v582_v22 }
 0x137   :  { %1196 = vmatpush3.bf16.msra.mxu1 %v1195_v47  ;;  %v479_v47 = vld [vmem:[#allocation7 + $0x2c8] sm:$0xff]  ;;  %v617_v34 = vmul.f32 0.16666667, %v601_v30 }
 0x138   :  { %1197 = vmatprep.subr.bf16.mxu1 %v1426_v0 }
 0x13b   :  { %1199 = vmatpush3.bf16.msra.mxu1 %v1198_v55  ;;  %v560_v55 = vadd.s32 8, %v1552_v31 }
 0x13c   :  { %1200 = vmatprep.subr.bf16.mxu1 %v1426_v0 }
 0x13f   :  { %1202 = vmatpush3.bf16.msra.mxu1 %v1201_v58  ;;  %v562_v58 = vadd.s32 24, %v1552_v31 }
 0x140   :  { %1203 = vmatprep.subr.bf16.mxu1 %v1426_v0 }
 0x141   :  { %v578_v4 = vcvt.s32.f32 %v562_v58  ;;  %v572_v58 = vadd.s32 104, %v1552_v31 }
 0x143   :  { %1205 = vmatpush3.bf16.msra.mxu1 %v1204_v61  ;;  %v576_v61 = vcvt.s32.f32 %v560_v55  ;;  %v588_v62 = vcvt.s32.f32 %v572_v58 }
 0x144   :  { %1206 = vmatprep.subr.bf16.mxu1 %v1426_v0 }
 0x145   :  { %v595_v7 = vadd.f32 0.5, %v576_v61 }
 0x147   :  { %1208 = vmatpush3.bf16.msra.mxu1 %v1207_v2  ;;  %v565_v2 = vadd.s32 48, %v1552_v31  ;;  %v611_v15 = vmul.f32 0.16666667, %v595_v7 }
 0x148   :  { %1209 = vmatprep.subr.bf16.mxu1 %v1426_v0 }
 0x149   :  { %v581_v18 = vcvt.s32.f32 %v565_v2 }
 0x14b   :  { %1211 = vmatpush3.bf16.msra.mxu1 %v1210_v5  ;;  %v579_v5 = vcvt.s32.f32 %v563_v59 }
 0x14c   :  { %1212 = vmatprep.subr.bf16.mxu1 %v1426_v0 }
 0x14d   :  { %v598_v13 = vadd.f32 0.5, %v579_v5 }
 0x14f   :  { %1214 = vmatpush3.bf16.msra.mxu1 %v1213_v8  ;;  %v610_v8 = vmul.f32 0.16666667, %v594_v63  ;;  %v614_v21 = vmul.f32 0.16666667, %v598_v13 }
 0x150   :  { %1239 = vmatprep.subr.bf16.mxu1 %v1426_v0 }
 0x151   :  { %v626_v16 = vfloor.f32 %v610_v8 }
 0x205   :  { %v243_v49 = vpop.f32.mrb[0].mxu1 }
 0x206   :  { %v244_v50 = vadd.f32 %v816_v48, %v243_v49  ;;  %v1005_v51 = vpop.f32.mrb[1].mxu1  ;;  %v480_v48 = vld [vmem:[#allocation7 + $0x2f8] sm:$0xff] }
 0x207   :  { %v1237_v49 = vpack.c.bf16 %v480_v48, %v479_v47  ;;  %v569_v48 = vadd.s32 80, %v1552_v31 }
 0x208   :  { %v247_v52 = vmax.f32 %v244_v50, 0.0  ;;  %v817_v50 = vld [vmem:[%s1659_s3 + $0x4] ss:$0 sm:$0xff] }
 0x20a   :  { %357 = vmatmul.mubr.f32.vlgmr.msra.gmra.mrb[2].mxu0 %v247_v52 }
 0x20b   :  { %1073 = vmatprep.mubr.msk.f32.mxu0 %vm1427_vm0, %v1428_v1  ;;  %1217 = vmatpush3.bf16.msra.mxu0 %v1216_v12  ;;  %v597_v12 = vadd.f32 0.5, %v578_v4  ;;  %v574_v4 = vadd.s32 120, %v1552_v31 }
 0x20c   :  { %1218 = vmatprep.subr.bf16.mxu0 %v1426_v0 }
 0x20d   :  { %v590_v8 = vcvt.s32.f32 %v574_v4 }
 0x20f   :  { %1220 = vmatpush3.bf16.msra.mxu0 %v1219_v14  ;;  %v599_v14 = vadd.f32 0.5, %v580_v6  ;;  %v607_v6 = vadd.f32 0.5, %v588_v62 }
 0x210   :  { %1221 = vmatprep.subr.bf16.mxu0 %v1426_v0 }
 0x211   :  { %v615_v25 = vmul.f32 0.16666667, %v599_v14  ;;  %v623_v10 = vmul.f32 0.16666667, %v607_v6 }
 0x213   :  { %1223 = vmatpush3.bf16.msra.mxu0 %v1222_v17  ;;  %v643_v17 = vmul.f32 0.16666667, %v642_v9  ;;  %v631_v32 = vfloor.f32 %v615_v25  ;;  %v639_v13 = vfloor.f32 %v623_v10 }
 0x214   :  { %1224 = vmatprep.subr.bf16.mxu0 %v1426_v0 }
 0x215   :  { %v1572_v24 = vfloor.f32 %v643_v17 }
 0x217   :  { %1226 = vmatpush3.bf16.msra.mxu0 %v1225_v20  ;;  %v613_v20 = vmul.f32 0.16666667, %v597_v12  ;;  %vm645_vm1 = vcmp.eq.f32.partialorder %v626_v16, %v1572_v24  ;;  %vm650_vm8 = vcmp.eq.f32.partialorder %v631_v32, %v1572_v24  ;;  %v609_v12 = vadd.f32 0.5, %v590_v8 }
 0x218   :  { %1227 = vmatprep.subr.bf16.mxu0 %v1426_v0 }
 0x219   :  { %v629_v28 = vfloor.f32 %v613_v20 }
 0x21b   :  { %1229 = vmatpush3.bf16.msra.mxu0 %v1228_v23  ;;  %v627_v23 = vfloor.f32 %v611_v15  ;;  %vm648_vm5 = vcmp.eq.f32.partialorder %v629_v28, %v1572_v24  ;;  %v625_v15 = vmul.f32 0.16666667, %v609_v12 }
 0x21c   :  { %1230 = vmatprep.subr.bf16.mxu0 %v1426_v0 }
 0x21d   :  { %vm646_vm2 = vcmp.eq.f32.partialorder %v627_v23, %v1572_v24  ;;  %v641_v17 = vfloor.f32 %v625_v15 }
 0x21e   :  { %vm1240_vm3 = vmpackc.low %vm646_vm2, %vm645_vm1 }
 0x21f   :  { %1232 = vmatpush3.bf16.msra.mxu0 %v1231_v26  ;;  %v600_v26 = vadd.f32 0.5, %v581_v18 }
 0x220   :  { %1233 = vmatprep.subr.bf16.mxu0 %v1426_v0 }
 0x221   :  { %v616_v33 = vmul.f32 0.16666667, %v600_v26 }
 0x223   :  { %1235 = vmatpush3.bf16.msra.mxu0 %v1234_v29  ;;  %v630_v29 = vfloor.f32 %v614_v21 }
 0x224   :  { %1236 = vmatprep.subr.bf16.mxu0 %v1426_v0 }
 0x225   :  { %vm649_vm7 = vcmp.eq.f32.partialorder %v630_v29, %v1572_v24 }
 0x226   :  { %vm1246_vm9 = vmpackc.low %vm650_vm8, %vm649_vm7  ;;  %vm660_vm7 = vcmp.eq.f32.partialorder %v641_v17, %v1572_v24 }
 0x227   :  { %1238 = vmatpush3.bf16.msra.mxu0 %v1237_v49  ;;  %v570_v49 = vadd.s32 88, %v1552_v31 }
 0x2dd   :  { %v358_v37 = vpop.f32.mrb[2].mxu0 }
 0x2de   :  { %v359_v38 = vadd.f32 %v358_v37, %v285_v35  ;;  %v360_v39 = vpop.f32.mrb[3].mxu0  ;;  %v1429_v35 = vmov 1.0|1.0   ;;  %v633_v37 = vfloor.f32 %v617_v34 }
 0x2df   :  { %v361_v40 = vadd.f32 %v360_v39, %v289_v36  ;;  %v632_v36 = vfloor.f32 %v616_v33 }
 0x2e0   :  { %363 = vst [vmem:[#allocation9] sm:$0xff] %v359_v38  ;;  %vm652_vm11 = vcmp.eq.f32.partialorder %v633_v37, %v1572_v24 }
 0x2e1   :  { %364 = vst [vmem:[#allocation11] sm:$0xff] %v361_v40  ;;  %v366_v41 = vmul.f32 0.5, %v361_v40  ;;  %vm651_vm10 = vcmp.eq.f32.partialorder %v632_v36, %v1572_v24 }
 0x2e2   :  { %vm1249_vm12 = vmpackc.low %vm652_vm11, %vm651_vm10 }
 0x2e3   :  { %v367_v42 = vmul.f32 1.442695, %v366_v41 }
 0x2e5   :  { %1275 = vpow2.f32 %v367_v42  ;;  %v567_v42 = vadd.s32 64, %v1552_v31 }
 0x2ef   :  { %v1276_v44 = vpop.eup %1275 }
 0x2f0   :  { %v369_v45 = vmul.f32 %v1276_v44, %v365_v43  ;;  %v568_v43 = vadd.s32 72, %v1552_v31  ;;  %v583_v44 = vcvt.s32.f32 %v567_v42 }
 0x2f2   :  { %v370_v46 = vadd.f32 %v369_v45, %v359_v38  ;;  %v818_v38 = vld [vmem:[%s1659_s3 + $0x5] ss:$0 sm:$0xff]  ;;  %v584_v45 = vcvt.s32.f32 %v568_v43  ;;  %s1430_s3 = smov [#allocation9]  }
 0x2f3   :  { %s788_s18 = sshll.u32 %s1430_s3, 4  ;;  %s789_s18 = int_to_ptr.vmem [resolvable:$true] %s788_s18 }
 0x2f4   :  { %1039 = vmatmul.mubr.f32.vlgmr.msra.gmra.mrb[2].mxu1 %v370_v46  ;;  %v602_v46 = vadd.f32 0.5, %v583_v44  ;;  %v603_v47 = vadd.f32 0.5, %v584_v45  ;;  %s1347_s1 = scalar_lea.vmem %s789_s18, 128  ;;  %p1352_p11 = scmp.lt.s32.totalorder %s789_s18, %s789_s18 }
 0x2f5   :  { %1108 = vmatprep.mubr.msk.f32.mxu1 %vm1427_vm0, %v1428_v1  ;;  %v561_v1 = vadd.s32 16, %v1552_v31  ;;  %1241 = vmatpush3.bf16.msk.msra.mxu1 %vm1240_vm3, %v1429_v35  ;;  %p1348_p10 = scmp.ne.s32.totalorder %s789_s18, %s1347_s1  ;;  %p1353_p12 = scmp.lt.s32.totalorder %s1347_s1, %s1347_s1 }
 0x2f6   :  { %1242 = vmatprep.subr.bf16.mxu1 %v1426_v0 }
 0x2f7   :  { %v577_v3 = vcvt.s32.f32 %v561_v1  ;;  %v571_v1 = vadd.s32 96, %v1552_v31  ;;  %p1354_p13 = por %p1353_p12, %p1352_p11 }
 0x2f9   :  { %v596_v11 = vadd.f32 0.5, %v577_v3  ;;  %v587_v61 = vcvt.s32.f32 %v571_v1  ;;  %v573_v3 = vadd.s32 112, %v1552_v31  ;;  %p1355_p0 = pnand %p1354_p13, %p1348_p10 }
 0x2fb   :  { %v612_v19 = vmul.f32 0.16666667, %v596_v11  ;;  %v606_v5 = vadd.f32 0.5, %v587_v61  ;;  %v589_v7 = vcvt.s32.f32 %v573_v3 }
 0x2fd   :  { %v628_v27 = vfloor.f32 %v612_v19  ;;  %v622_v9 = vmul.f32 0.16666667, %v606_v5  ;;  %v608_v11 = vadd.f32 0.5, %v589_v7 }
 0x2ff   :  { %vm647_vm4 = vcmp.eq.f32.partialorder %v628_v27, %v1572_v24  ;;  %v638_v31 = vfloor.f32 %v622_v9  ;;  %v624_v14 = vmul.f32 0.16666667, %v608_v11 }
 0x300   :  { %vm1243_vm6 = vmpackc.low %vm648_vm5, %vm647_vm4  ;;  %vm658_vm4 = vcmp.eq.f32.partialorder %v639_v13, %v1572_v24 }
 0x301   :  { %1244 = vmatpush3.bf16.msk.msra.mxu1 %vm1243_vm6, %v1429_v35  ;;  %vm657_vm3 = vcmp.eq.f32.partialorder %v638_v31, %v1572_v24  ;;  %v640_v16 = vfloor.f32 %v624_v14 }
 0x302   :  { %1245 = vmatprep.subr.bf16.mxu1 %v1426_v0  ;;  %vm1258_vm5 = vmpackc.low %vm658_vm4, %vm657_vm3 }
 0x303   :  { %vm659_vm6 = vcmp.eq.f32.partialorder %v640_v16, %v1572_v24 }
 0x304   :  { %vm1261_vm8 = vmpackc.low %vm660_vm7, %vm659_vm6 }
 0x305   :  { %1247 = vmatpush3.bf16.msk.msra.mxu1 %vm1246_vm9, %v1429_v35 }
 0x306   :  { %1248 = vmatprep.subr.bf16.mxu1 %v1426_v0 }
 0x309   :  { %1250 = vmatpush3.bf16.msk.msra.mxu1 %vm1249_vm12, %v1429_v35 }
 0x30a   :  { %1251 = vmatprep.subr.bf16.mxu1 %v1426_v0 }
 0x3c7   :  { %v460_v51 = vpop.f32.mrb[2].mxu1 }
 0x3c8   :  { %v461_v52 = vadd.f32 %v817_v50, %v460_v51  ;;  %v1040_v53 = vpop.f32.mrb[3].mxu1  ;;  %v618_v50 = vmul.f32 0.16666667, %v602_v46  ;;  %v619_v51 = vmul.f32 0.16666667, %v603_v47 }
 0x3c9   :  { %v586_v53 = vcvt.s32.f32 %v570_v49 }
 0x3ca   :  { %v464_v54 = vmax.f32 %v461_v52, 0.0  ;;  %v585_v52 = vcvt.s32.f32 %v569_v48  ;;  %v635_v55 = vfloor.f32 %v619_v51 }
 0x3cb   :  { %v605_v57 = vadd.f32 0.5, %v586_v53 }
 0x3cc   :  { %1074 = vmatmul.mubr.f32.vlgmr.msra.gmra.mrb[4].mxu0 %v464_v54  ;;  %v634_v54 = vfloor.f32 %v618_v50  ;;  %v604_v56 = vadd.f32 0.5, %v585_v52  ;;  %vm654_vm14 = vcmp.eq.f32.partialorder %v635_v55, %v1572_v24 }
 0x3cd   :  { %v621_v60 = vmul.f32 0.16666667, %v605_v57 }
 0x3ce   :  { %vm653_vm13 = vcmp.eq.f32.partialorder %v634_v54, %v1572_v24  ;;  %v620_v59 = vmul.f32 0.16666667, %v604_v56 }
 0x3cf   :  { %vm1252_vm15 = vmpackc.low %vm654_vm14, %vm653_vm13  ;;  %v637_v2 = vfloor.f32 %v621_v60 }
 0x3d0   :  { %1253 = vmatpush3.bf16.msk.msra.mxu1 %vm1252_vm15, %v1429_v35  ;;  %v636_v63 = vfloor.f32 %v620_v59 }
 0x3d1   :  { %1254 = vmatprep.subr.bf16.mxu1 %v1426_v0  ;;  %vm656_vm1 = vcmp.eq.f32.partialorder %v637_v2, %v1572_v24 }
 0x3d2   :  { %vm655_vm0 = vcmp.eq.f32.partialorder %v636_v63, %v1572_v24 }
 0x3d3   :  { %vm1255_vm2 = vmpackc.low %vm656_vm1, %vm655_vm0 }
 0x3d4   :  { %1256 = vmatpush3.bf16.msk.msra.mxu1 %vm1255_vm2, %v1429_v35 }
 0x3d5   :  { %1257 = vmatprep.subr.bf16.mxu1 %v1426_v0 }
 0x3d8   :  { %1259 = vmatpush3.bf16.msk.msra.mxu1 %vm1258_vm5, %v1429_v35 }
 0x3d9   :  { %1260 = vmatprep.subr.bf16.mxu1 %v1426_v0 }
 0x3dc   :  { %1262 = vmatpush3.bf16.msk.msra.mxu1 %vm1261_vm8, %v1429_v35 }
 0x49f   :  { %v554_v39 = vpop.f32.mrb[4].mxu0 }
 0x4a0   :  { %v1593_v40 = vadd.f32 %v818_v38, %v554_v39  ;;  %v1075_v41 = vpop.f32.mrb[5].mxu0 }
 0x4a2   :  { %693 = vmax.xlane.f32.xlu0 %v1593_v40 }
 0x52f   :  { %v694_v18 = vpop.xlane.xlu0 %693 }
 0x530   :  { %v695_v19 = vsub.f32 %v1593_v40, %v694_v18 }
 0x532   :  { %v696_v20 = vmul.f32 1.442695, %v695_v19 }
 0x534   :  { %1277 = vpow2.f32 %v696_v20 }
 0x53e   :  { %v1278_v21 = vpop.eup %1277 }
 0x53f   :  { %1109 = vmatmul.mubr.f32.vlgmr.msra.gmra.mrb[4].mxu1 %v1278_v21 }
 0x540   :  { %1358 = shalt.err (!%p1355_p0)
}
 0x541   :  { %s1359_s21 = scalar_lea.hbm %s1661_s5, 128 }
 0x542   :  { %p1360_p1 = scmp.ne.s32.totalorder %s1661_s5, %s1359_s21  ;;  %p1363_p2 = scmp.lt.u32.totalorder %s1359_s21, %s1661_s5 }
 0x544   :  { %p1365_p3 = pnand %p1363_p2, %p1360_p1 }
 0x546   :  { %1368 = shalt.err (!%p1365_p3)
}
 0x547   :  { %791 = dma.vmem_to_hbm [thread:$0]  %s789_s18, 128, %s1661_s5, [#allocation10]  }
 0x548   :  { %s1431_s29 = smov [#allocation11]  }
 0x549   :  { %s798_s30 = sshll.u32 %s1431_s29, 4  ;;  %s799_s30 = int_to_ptr.vmem [resolvable:$true] %s798_s30 }
 0x54a   :  { %s1369_s0 = scalar_lea.vmem %s799_s30, 128  ;;  %p1374_p5 = scmp.lt.s32.totalorder %s799_s30, %s799_s30 }
 0x54b   :  { %p1370_p4 = scmp.ne.s32.totalorder %s799_s30, %s1369_s0  ;;  %p1375_p6 = scmp.lt.s32.totalorder %s1369_s0, %s1369_s0 }
 0x54d   :  { %p1376_p7 = por %p1375_p6, %p1374_p5 }
 0x54f   :  { %p1377_p8 = pnand %p1376_p7, %p1370_p4 }
 0x551   :  { %1380 = shalt.err (!%p1377_p8)
}
 0x552   :  { %s1381_s8 = scalar_lea.hbm %s1662_s6, 128 }
 0x553   :  { %p1382_p9 = scmp.ne.s32.totalorder %s1662_s6, %s1381_s8  ;;  %p1385_p10 = scmp.lt.u32.totalorder %s1381_s8, %s1662_s6 }
 0x555   :  { %p1387_p11 = pnand %p1385_p10, %p1382_p9 }
 0x557   :  { %1390 = shalt.err (!%p1387_p11)
}
 0x558   :  { %801 = dma.vmem_to_hbm [thread:$0]  %s799_s30, 128, %s1662_s6, [#allocation10]  }
 0x559   :  { %s1432_s13 = smov [#allocation8]  }
 0x55a   :  { %s778_s14 = sshll.u32 %s1432_s13, 4  ;;  %s779_s14 = int_to_ptr.vmem [resolvable:$true] %s778_s14 }
 0x55b   :  { %s1391_s15 = scalar_lea.vmem %s779_s14, 128  ;;  %p1396_p13 = scmp.lt.s32.totalorder %s779_s14, %s779_s14 }
 0x55c   :  { %p1392_p12 = scmp.ne.s32.totalorder %s779_s14, %s1391_s15  ;;  %p1397_p0 = scmp.lt.s32.totalorder %s1391_s15, %s1391_s15 }
 0x55e   :  { %p1398_p1 = por %p1397_p0, %p1396_p13 }
 0x560   :  { %p1399_p2 = pnand %p1398_p1, %p1392_p12 }
 0x612   :  { %v764_v0 = vpop.f32.mrb[4].mxu1 }
 0x613   :  { %1279 = vlog2.f32 %v764_v0  ;;  %v1110_v22 = vpop.f32.mrb[5].mxu1 }
 0x61d   :  { %v1280_v23 = vpop.eup %1279 }
 0x61e   :  { %v769_v24 = vmul.f32 0.6931472, %v1280_v23 }
 0x620   :  { %v770_v25 = vsub.f32 %v695_v19, %v769_v24 }
 0x622   :  { %771 = vst [vmem:[#allocation8] sm:$0xff] %v770_v25 }
 0x623   :  { %1402 = shalt.err (!%p1399_p2)
}
 0x624   :  { %s1403_s6 = scalar_lea.hbm %s1660_s4, 128 }
 0x625   :  { %p1404_p3 = scmp.ne.s32.totalorder %s1660_s4, %s1403_s6  ;;  %p1407_p4 = scmp.lt.u32.totalorder %s1403_s6, %s1660_s4 }
 0x627   :  { %p1409_p5 = pnand %p1407_p4, %p1404_p3 }
 0x629   :  { %1412 = shalt.err (!%p1409_p5)
}
 0x62a   :  { %781 = dma.vmem_to_hbm [thread:$0]  %s779_s14, 128, %s1660_s4, [#allocation4]  }
 0x62b   :  { %1417 = dma.done.wait [#allocation4], 128  }
 0x62c   :  { %1418 = vsyncadd [#allocation4], 4294967168 }
 0x62d   :  { %1419 = dma.done.wait [#allocation10], 256  }
 0x62e   :  { %1420 = vsyncadd [#allocation10], 4294967040 }
 0x62f   :  { %811 = vsyncpa [#allocation3], 1 }
 0x630   :  { %812 = vsyncpa [#allocation6], 1 }
 0x631   :  { %813 = vsyncpa [#allocation4], 1 }
 0x632   :  { %814 = vsyncpa [#allocation10], 1 }

</bundles_post_ra>
